<compile_context>
chip_gen: v7x
topology: tpu7x:2x2x1
jax: 0.10.0
libtpu: 0.0.40
codegen_flags: <defaults>
</compile_context>

<pallas_src>
import jax
import jax.numpy as jnp
from jax.experimental import pallas as pl
from jax.experimental.pallas import tpu as pltpu

LANES = 128
SUBLANES = 8
SLAB = SUBLANES * LANES                  # 1024 elements
CHUNK_ROWS = 512                         # 512 x 128 f32 = 256 KiB per temporary
MAX_BLOCK_ROWS = 16384
INPUT_VMEM_BUDGET = 24 * 1024 * 1024     # double-buffered input working set


def _round_up(v, m):
    return ((v + m - 1) // m) * m


def _choose_block_rows(rows, bytes_per_row):
    """Pick the per-grid-step tile height (rows of 128 lanes)."""
    rows_by_vmem = (INPUT_VMEM_BUDGET // (2 * bytes_per_row)) // 32 * 32
    cap = max(32, min(MAX_BLOCK_ROWS, rows_by_vmem))
    if rows > cap:
        return cap
    if rows >= 64:
        # Fits in one tile, but split ~in half so the "parallel" grid axis has
        # >= 2 steps (v7x megacore); each half is still a large DMA.
        return min(_round_up((rows + 1) // 2, 32), rows)
    return rows  # tiny problem: one full-extent block (rows is a multiple of 8)


def masked_l2_loss(x, y, mask):
    """MaskedLoss(loss='l2'): mean((x*mask - y*mask)**2), accumulated in f32.

    x / y / mask may have any (identical) shape and may keep narrow native
    dtypes (bf16 x/y, int8/uint8 mask); the upcast happens per-tile in-kernel.
    """
    assert x.shape == y.shape == mask.shape
    n_elems = x.size

    xf, yf, mf = x.reshape(-1), y.reshape(-1), mask.reshape(-1)
    main = (n_elems // SLAB) * SLAB
    tail = n_elems - main

    # <1024-element tail: a handful of plain-JAX ops, negligible vs. the bulk.
    tail_sum = jnp.float32(0.0)
    if tail:
        xt = xf[main:].astype(jnp.float32)
        yt = yf[main:].astype(jnp.float32)
        mt = mf[main:].astype(jnp.float32)
        dt = xt * mt - yt * mt
        tail_sum = jnp.sum(dt * dt)

    if main == 0:
        return tail_sum / jnp.float32(n_elems)

    if tail:
        # Ragged sizes only: XLA may materialize this prefix slice (one extra
        # pass); sizes that are a multiple of 1024 take the zero-copy path.
        xf, yf, mf = xf[:main], yf[:main], mf[:main]
    x2 = xf.reshape(-1, LANES)
    y2 = yf.reshape(-1, LANES)
    m2 = mf.reshape(-1, LANES)
    rows = x2.shape[0]                   # always a multiple of 8

    bytes_per_row = LANES * (x2.dtype.itemsize + y2.dtype.itemsize + m2.dtype.itemsize)
    block_rows = _choose_block_rows(rows, bytes_per_row)
    num_blocks = -(-rows // block_rows)
    rem = rows - (num_blocks - 1) * block_rows      # valid rows in last block
    needs_tail_mask = rem != block_rows

    def kernel(x_ref, y_ref, m_ref, out_ref):
        def chunk_sq(base, size):
            # Match the module exactly: (x*mask) - (y*mask), then square.
            xd = x_ref[pl.ds(base, size), :].astype(jnp.float32)
            yd = y_ref[pl.ds(base, size), :].astype(jnp.float32)
            md = m_ref[pl.ds(base, size), :].astype(jnp.float32)
            d = xd * md - yd * md
            return d * d

        if block_rows % 32 != 0:
            # Tiny single-block problem (< 64 rows): no chunking, no masking.
            d2 = chunk_sq(0, block_rows)
            out_ref[...] = jnp.sum(
                d2.reshape(block_rows // SUBLANES, SUBLANES, LANES), axis=0)
            return

        if needs_tail_mask:
            # Valid rows in the current block (>= block_rows except last step).
            valid_rows = rows - pl.program_id(0) * block_rows

        # 4 independent accumulator chains (ILP) instead of one serial chain.
        acc = jnp.zeros((4, SUBLANES, LANES), jnp.float32)
        base = 0
        while base < block_rows:                       # static unroll
            size = min(CHUNK_ROWS, block_rows - base)  # multiple of 32
            d2 = chunk_sq(base, size)
            if needs_tail_mask and base + size > rem:
                # Only chunks that can overlap the ragged boundary pay for the
                # row mask; it is all-true on non-final grid steps.  The mask
                # stays AFTER the square so garbage rows from the padded last
                # block (possibly NaN/Inf) are fully discarded.
                ridx = base + jax.lax.broadcasted_iota(jnp.int32, d2.shape, 0)
                d2 = jnp.where(ridx < valid_rows, d2, jnp.float32(0.0))
            acc = acc + jnp.sum(
                d2.reshape(size // 32, 4, SUBLANES, LANES), axis=0)
            base += size

        out_ref[...] = (acc[0] + acc[1]) + (acc[2] + acc[3])

    in_spec = pl.BlockSpec((block_rows, LANES), lambda i: (i, 0))
    # Double-buffered inputs + chunk-sized temporaries + headroom; explicit so
    # the big tile also compiles on v5e's 16 MiB scoped-VMEM default while
    # staying well under v7x's 64 MiB physical VMEM.
    vmem_limit = int(min(48 * 1024 * 1024,
                         max(32 * 1024 * 1024,
                             2 * block_rows * bytes_per_row + (8 << 20))))

    partials = pl.pallas_call(
        kernel,
        out_shape=jax.ShapeDtypeStruct((num_blocks * SUBLANES, LANES), jnp.float32),
        grid_spec=pltpu.PrefetchScalarGridSpec(
            num_scalar_prefetch=0,
            grid=(num_blocks,),
            in_specs=[in_spec, in_spec, in_spec],
            out_specs=pl.BlockSpec((SUBLANES, LANES), lambda i: (i, 0)),
        ),
        compiler_params=pltpu.CompilerParams(
            dimension_semantics=("parallel",),   # no cross-step carry -> megacore OK
            vmem_limit_bytes=vmem_limit,
        ),
    )(x2, y2, m2)

    # Tiny final reduction + mean divide (negligible vs. streamed HBM traffic).
    return (jnp.sum(partials) + tail_sum) / jnp.float32(n_elems)


def masked_l2_loss_ref(x, y, mask):
    xm = x.astype(jnp.float32) * mask.astype(jnp.float32)
    ym = y.astype(jnp.float32) * mask.astype(jnp.float32)
    return jnp.mean((xm - ym) ** 2)


if __name__ == "__main__":
    key = jax.random.PRNGKey(0)
    kx, ky, km = jax.random.split(key, 3)

    # NCHW, like the PyTorch module would receive.
    x = jax.random.normal(kx, (2, 4, 16, 16), dtype=jnp.float32)
    y = jax.random.normal(ky, (2, 4, 16, 16), dtype=jnp.float32)
    mask = (jax.random.uniform(km, (2, 4, 16, 16)) > 0.5).astype(jnp.float32)
    out = jax.block_until_ready(masked_l2_loss(x, y, mask))
    ref = masked_l2_loss_ref(x, y, mask)
    assert jnp.allclose(out, ref, rtol=1e-4, atol=1e-6), (out, ref)

    # Larger case: exercises the chunked multi-block path with a ragged last
    # block (rows = 1160 -> two 608-row parallel blocks, in-kernel row mask).
    xb = jax.random.normal(kx, (145, 8, 128), dtype=jnp.float32)
    yb = jax.random.normal(ky, (145, 8, 128), dtype=jnp.float32)
    mb = (jax.random.uniform(km, (145, 8, 128)) > 0.5).astype(jnp.float32)
    outb = jax.block_until_ready(masked_l2_loss(xb, yb, mb))
    refb = masked_l2_loss_ref(xb, yb, mb)
    assert jnp.allclose(outb, refb, rtol=1e-4, atol=1e-6), (outb, refb)

    # Ragged element count: exercises the wrapper-side <1024-element tail path.
    xr = jax.random.normal(kx, (3, 5, 129), dtype=jnp.float32)
    yr = jax.random.normal(ky, (3, 5, 129), dtype=jnp.float32)
    mr = (jax.random.uniform(km, (3, 5, 129)) > 0.5).astype(jnp.float32)
    outr = jax.block_until_ready(masked_l2_loss(xr, yr, mr))
    refr = masked_l2_loss_ref(xr, yr, mr)
    assert jnp.allclose(outr, refr, rtol=1e-4, atol=1e-6), (outr, refr)

    print("KERNEL_OK")
</pallas_src>

<mosaic_0001>
module attributes {stable_mosaic.version = 11 : i64} {
  func.func @kernel(%arg0: i32, %arg1: memref<16x128xf32, #tpu.memory_space<vmem>>, %arg2: memref<16x128xf32, #tpu.memory_space<vmem>>, %arg3: memref<16x128xf32, #tpu.memory_space<vmem>>, %arg4: memref<8x128xf32, #tpu.memory_space<vmem>>) attributes {dimension_semantics = [#tpu.dimension_semantics<parallel>], iteration_bounds = array<i64: 1>, scalar_prefetch = 0 : i64, scratch_operands = 0 : i64, tpu.core_type = #tpu.core_type<tc>, window_params = [{transform_indices = @transform_0, window_bounds = array<i64: 16, 128>}, {transform_indices = @transform_1, window_bounds = array<i64: 16, 128>}, {transform_indices = @transform_2, window_bounds = array<i64: 16, 128>}, {transform_indices = @transform_3, window_bounds = array<i64: 8, 128>}]} {
    %c0 = arith.constant 0 : index
    %c0_0 = arith.constant 0 : index
    %0 = vector.load %arg1[%c0, %c0_0] : memref<16x128xf32, #tpu.memory_space<vmem>>, vector<16x128xf32>
    %c0_1 = arith.constant 0 : index
    %c0_2 = arith.constant 0 : index
    %1 = vector.load %arg2[%c0_1, %c0_2] : memref<16x128xf32, #tpu.memory_space<vmem>>, vector<16x128xf32>
    %c0_3 = arith.constant 0 : index
    %c0_4 = arith.constant 0 : index
    %2 = vector.load %arg3[%c0_3, %c0_4] : memref<16x128xf32, #tpu.memory_space<vmem>>, vector<16x128xf32>
    %3 = arith.mulf %0, %2 : vector<16x128xf32>
    %4 = arith.mulf %1, %2 : vector<16x128xf32>
    %5 = arith.subf %3, %4 : vector<16x128xf32>
    %6 = arith.mulf %5, %5 : vector<16x128xf32>
    %7 = vector.shape_cast %6 : vector<16x128xf32> to vector<2x8x128xf32>
    %cst = arith.constant dense<0.000000e+00> : vector<8x128xf32>
    %8 = vector.multi_reduction <add>, %7, %cst [0] : vector<2x8x128xf32> to vector<8x128xf32>
    %c0_5 = arith.constant 0 : index
    %c0_6 = arith.constant 0 : index
    %9 = vector.load %arg4[%c0_5, %c0_6] : memref<8x128xf32, #tpu.memory_space<vmem>>, vector<8x128xf32>
    tpu.vector_store %arg4[%c0_5, %c0_6], %8 {strides = array<i32>} : memref<8x128xf32, #tpu.memory_space<vmem>>, vector<8x128xf32>,
    return
  }
  func.func @transform_0(%arg0: i32) -> (i32, i32) {
    %c0_i32 = arith.constant 0 : i32
    %c0_i32_0 = arith.constant 0 : i32
    return %arg0, %c0_i32 : i32, i32
  }
  func.func @transform_1(%arg0: i32) -> (i32, i32) {
    %c0_i32 = arith.constant 0 : i32
    %c0_i32_0 = arith.constant 0 : i32
    return %arg0, %c0_i32 : i32, i32
  }
  func.func @transform_2(%arg0: i32) -> (i32, i32) {
    %c0_i32 = arith.constant 0 : i32
    %c0_i32_0 = arith.constant 0 : i32
    return %arg0, %c0_i32 : i32, i32
  }
  func.func @transform_3(%arg0: i32) -> (i32, i32) {
    %c0_i32 = arith.constant 0 : i32
    %c0_i32_0 = arith.constant 0 : i32
    return %arg0, %c0_i32 : i32, i32
  }
}

</mosaic_0001>

<bundles_post_ra>
// kernel: tpu_custom_call.1
= control target key start
LH: loop header
LB: loop body
LE: loop exit
PB: predicated region body
PF: predicated region fallthrough
CT: control target
= control target key end

     0   :  { %8 = vsyncpa [#allocation3], 0  ;;  %s278_s0 = inlined_call_operand.hbm [shape: f32[16,128], index: 0, kind: input, shape index: {}]   ;;  %s279_s1 = inlined_call_operand.hbm [shape: f32[16,128], index: 1, kind: input, shape index: {}]   ;;  %s280_s2 = inlined_call_operand.hbm [shape: f32[16,128], index: 2, kind: input, shape index: {}]   ;;  %s281_s3 = inlined_call_operand.hbm [shape: f32[8,128], index: 3, kind: output, shape index: {}]  }
   0x1   :  { %9 = vsyncpa [#allocation6], 0 }
   0x2   :  { %10 = vsyncpa [#allocation4], 0  ;;  %s188_s12 = smov [#allocation5]   ;;  %s189_s14 = smov [#allocation2]  }
   0x3   :  { %s28_s13 = sshll.u32 %s188_s12, 4  ;;  %s16_s15 = sshll.u32 %s189_s14, 4  ;;  %s29_s13 = int_to_ptr.vmem [resolvable:$true] %s28_s13  ;;  %s214_s15 = int_to_ptr.vmem [resolvable:$true] %s16_s15 }
   0x4   :  { %s94_s18 = scalar_lea.hbm %s279_s1, 256 }
   0x5   :  { %p95_p0 = scmp.ne.s32.totalorder %s279_s1, %s94_s18  ;;  %p98_p1 = scmp.lt.u32.totalorder %s94_s18, %s279_s1 }
   0x7   :  { %p100_p2 = pnand %p98_p1, %p95_p0 }
   0x9   :  { %103 = shalt.err (!%p100_p2)
}
   0xa   :  { %s104_s23 = scalar_lea.vmem %s29_s13, 256  ;;  %p109_p4 = scmp.lt.s32.totalorder %s29_s13, %s29_s13 }
   0xb   :  { %p105_p3 = scmp.ne.s32.totalorder %s29_s13, %s104_s23  ;;  %p110_p5 = scmp.lt.s32.totalorder %s104_s23, %s104_s23 }
   0xd   :  { %p111_p6 = por %p110_p5, %p109_p4 }
   0xf   :  { %p112_p7 = pnand %p111_p6, %p105_p3 }
  0x11   :  { %115 = shalt.err (!%p112_p7)
}
  0x12   :  { %s190_s24 = smov 128   ;;  %s191_s25 = smov 8  }
  0x13   :  { %34 = dma.hbm_to_vmem [thread:$0]  %s279_s1, 256, %s29_s13, [#allocation6], %s190_s24, %s190_s24, %s191_s25  }
  0x14   :  { %s116_s30 = scalar_lea.hbm %s278_s0, 256 }
  0x15   :  { %p117_p8 = scmp.ne.s32.totalorder %s278_s0, %s116_s30  ;;  %p120_p9 = scmp.lt.u32.totalorder %s116_s30, %s278_s0 }
  0x17   :  { %p122_p10 = pnand %p120_p9, %p117_p8 }
  0x19   :  { %125 = shalt.err (!%p122_p10)
}
  0x1a   :  { %s126_s8 = scalar_lea.vmem %s214_s15, 256  ;;  %p131_p12 = scmp.lt.s32.totalorder %s214_s15, %s214_s15 }
  0x1b   :  { %p127_p11 = scmp.ne.s32.totalorder %s214_s15, %s126_s8  ;;  %p132_p13 = scmp.lt.s32.totalorder %s126_s8, %s126_s8 }
  0x1d   :  { %p133_p0 = por %p132_p13, %p131_p12 }
  0x1f   :  { %p134_p1 = pnand %p133_p0, %p127_p11 }
  0x21   :  { %137 = shalt.err (!%p134_p1)
}
  0x22   :  { %22 = dma.hbm_to_vmem [thread:$0]  %s278_s0, 256, %s214_s15, [#allocation3], %s190_s24, %s190_s24, %s191_s25  }
  0x23   :  { %s192_s10 = smov [#allocation7]   ;;  %s138_s14 = scalar_lea.hbm %s280_s2, 256 }
  0x24   :  { %s40_s11 = sshll.u32 %s192_s10, 4  ;;  %p139_p2 = scmp.ne.s32.totalorder %s280_s2, %s138_s14  ;;  %s41_s11 = int_to_ptr.vmem [resolvable:$true] %s40_s11 }
  0x25   :  { %p142_p3 = scmp.lt.u32.totalorder %s138_s14, %s280_s2 }
  0x27   :  { %p144_p4 = pnand %p142_p3, %p139_p2 }
  0x29   :  { %147 = shalt.err (!%p144_p4)
}
  0x2a   :  { %s148_s20 = scalar_lea.vmem %s41_s11, 256  ;;  %p153_p6 = scmp.lt.s32.totalorder %s41_s11, %s41_s11 }
  0x2b   :  { %p149_p5 = scmp.ne.s32.totalorder %s41_s11, %s148_s20  ;;  %p154_p7 = scmp.lt.s32.totalorder %s148_s20, %s148_s20 }
  0x2d   :  { %p155_p8 = por %p154_p7, %p153_p6 }
  0x2f   :  { %p156_p9 = pnand %p155_p8, %p149_p5 }
  0x31   :  { %159 = shalt.err (!%p156_p9)
}
  0x32   :  { %46 = dma.hbm_to_vmem [thread:$0]  %s280_s2, 256, %s41_s11, [#allocation6], %s190_s24, %s190_s24, %s191_s25  }
  0x33   :  { %182 = dma.done.wait [#allocation3], 256  }
  0x34   :  { %183 = vsyncadd [#allocation3], 4294967040 }
  0x35   :  { %184 = dma.done.wait [#allocation6], 512  }
  0x36   :  { %185 = vsyncadd [#allocation6], 4294966784  ;;  %v56_v0 = vld [vmem:[#allocation2] sm:$0xff]  ;;  %v57_v1 = vld [vmem:[#allocation2 + $0x8] sm:$0xff]  ;;  %s193_s21 = smov [#allocation8]  }
  0x37   :  { %v58_v2 = vld [vmem:[#allocation5] sm:$0xff]  ;;  %v59_v3 = vld [vmem:[#allocation5 + $0x8] sm:$0xff]  ;;  %v60_v4 = vld [vmem:[#allocation7] sm:$0xff]  ;;  %s78_s22 = sshll.u32 %s193_s21, 4  ;;  %s79_s22 = int_to_ptr.vmem [resolvable:$true] %s78_s22 }
  0x38   :  { %v61_v5 = vld [vmem:[#allocation7 + $0x8] sm:$0xff]  ;;  %v62_v6 = vmul.f32 %v60_v4, %v56_v0  ;;  %v64_v8 = vmul.f32 %v60_v4, %v58_v2  ;;  %s160_s2 = scalar_lea.vmem %s79_s22, 128  ;;  %p165_p11 = scmp.lt.s32.totalorder %s79_s22, %s79_s22 }
  0x39   :  { %v63_v7 = vmul.f32 %v61_v5, %v57_v1  ;;  %v65_v9 = vmul.f32 %v61_v5, %v59_v3  ;;  %p161_p10 = scmp.ne.s32.totalorder %s79_s22, %s160_s2  ;;  %p166_p12 = scmp.lt.s32.totalorder %s160_s2, %s160_s2 }
  0x3a   :  { %v66_v10 = vsub.f32 %v62_v6, %v64_v8 }
  0x3b   :  { %v67_v11 = vsub.f32 %v63_v7, %v65_v9  ;;  %p167_p13 = por %p166_p12, %p165_p11 }
  0x3c   :  { %v68_v12 = vmul.f32 %v66_v10, %v66_v10 }
  0x3d   :  { %v69_v13 = vmul.f32 %v67_v11, %v67_v11  ;;  %p168_p0 = pnand %p167_p13, %p161_p10 }
  0x3f   :  { %v70_v14 = vadd.f32 %v69_v13, %v68_v12 }
  0x41   :  { %71 = vst [vmem:[#allocation8] sm:$0xff] %v70_v14 }
  0x42   :  { %171 = shalt.err (!%p168_p0)
}
  0x43   :  { %s172_s25 = scalar_lea.hbm %s281_s3, 128 }
  0x44   :  { %p173_p1 = scmp.ne.s32.totalorder %s281_s3, %s172_s25  ;;  %p176_p2 = scmp.lt.u32.totalorder %s172_s25, %s281_s3 }
  0x46   :  { %p178_p3 = pnand %p176_p2, %p173_p1 }
  0x48   :  { %181 = shalt.err (!%p178_p3)
}
  0x49   :  { %81 = dma.vmem_to_hbm [thread:$0]  %s79_s22, 128, %s281_s3, [#allocation4]  }
  0x4a   :  { %186 = dma.done.wait [#allocation4], 128  }
  0x4b   :  { %187 = vsyncadd [#allocation4], 4294967168 }
  0x4c   :  { %85 = vsyncpa [#allocation3], 1 }
  0x4d   :  { %86 = vsyncpa [#allocation6], 1 }
  0x4e   :  { %87 = vsyncpa [#allocation4], 1 }

</bundles_post_ra>
